<compile_context>
chip_gen: v6e
topology: v6e:2x2x1
jax: 0.10.0
libtpu: 0.0.40
codegen_flags: <defaults>
</compile_context>

<pallas_src>
import jax
import jax.numpy as jnp
from jax.experimental import pallas as pl
from jax.experimental.pallas import tpu as pltpu

EPS = 0.01          # self.eps_param
GLOBAL_BIAS = 0.3   # GlobalBiasAdd(0.3) for both alpha and beta

LANE = 128
SUBLANE = 8
TR_MAX = 1024       # rows per tile; (6+2)*TR*128*4 B = 4 MiB/step, 8 MiB dbl-buffered


def _bias_alpha_beta_kernel(mu_ref, ups_ref, ua_ref, ia_ref, ub_ref, ib_ref,
                            alpha_ref, beta_ref):
    """All refs are (TR, 128) f32 tiles (sublane- and lane-dense)."""
    eps = jnp.float32(EPS)
    gbias = jnp.float32(GLOBAL_BIAS)

    mu = mu_ref[...]
    ups = ups_ref[...]

    # alpha = max(mu * upsilon, eps); beta = max(upsilon - alpha, eps)
    alpha = jnp.maximum(mu * ups, eps)
    beta = jnp.maximum(ups - alpha, eps)
    # + global bias, + gathered per-user / per-item biases, clamp at eps
    alpha = jnp.maximum(alpha + gbias + ua_ref[...] + ia_ref[...], eps)
    beta = jnp.maximum(beta + gbias + ub_ref[...] + ib_ref[...], eps)

    alpha_ref[...] = alpha
    beta_ref[...] = beta


def bias_alpha_beta(uid, iid, mu, upsilon,
                    uid_alpha_w, iid_alpha_w, uid_beta_w, iid_beta_w):
    """Pallas-backed BiasAlphaBeta.forward.

    uid, iid:     [B] int
    mu, upsilon:  [B, 1] float32
    *_w:          embedding tables, [num_users, 1] / [num_items, 1] float32
    Returns (mu, upsilon, alpha, beta) like the PyTorch module.
    """
    B = uid.shape[0]
    uid = uid.astype(jnp.int32)
    iid = iid.astype(jnp.int32)
    mu32 = mu.astype(jnp.float32).reshape(B)
    ups32 = upsilon.astype(jnp.float32).reshape(B)

    # O(B) embedding gather (embedding dim is 1 -> each row is a single f32).
    # XLA-native gather; out-of-range indices clamp (jnp semantics) rather
    # than raise like nn.Embedding.
    ua = uid_alpha_w.astype(jnp.float32).reshape(-1)[uid]
    ia = iid_alpha_w.astype(jnp.float32).reshape(-1)[iid]
    ub = uid_beta_w.astype(jnp.float32).reshape(-1)[uid]
    ib = iid_beta_w.astype(jnp.float32).reshape(-1)[iid]

    # Sublane/lane-dense 2-D layout: (rows, 128), rows a multiple of the tile.
    rows = max(pl.cdiv(B, LANE), 1)
    # Aim for >= 2 grid steps when there is enough work (v7x megacore +
    # pipeline overlap), capped by the ~4 MiB/step VMEM budget (TR_MAX rows).
    half_rows = SUBLANE * pl.cdiv(pl.cdiv(rows, 2), SUBLANE)
    tr = max(SUBLANE, min(TR_MAX, half_rows))
    rows_pad = tr * pl.cdiv(rows, tr)
    b_pad = rows_pad * LANE

    def to_2d(v):
        if b_pad != B:
            v = jnp.pad(v, (0, b_pad - B))     # no-op when B is already aligned
        return v.reshape(rows_pad, LANE)

    inputs = [to_2d(v) for v in (mu32, ups32, ua, ia, ub, ib)]

    spec = pl.BlockSpec((tr, LANE), lambda i: (i, 0))
    alpha2d, beta2d = pl.pallas_call(
        _bias_alpha_beta_kernel,
        grid=(rows_pad // tr,),
        in_specs=[spec] * 6,
        out_specs=[spec, spec],
        out_shape=[jax.ShapeDtypeStruct((rows_pad, LANE), jnp.float32)] * 2,
        compiler_params=pltpu.CompilerParams(
            dimension_semantics=("parallel",),
            vmem_limit_bytes=32 * 1024 * 1024),
    )(*inputs)

    # Back to the module's (B, 1) shape (free when B is aligned).
    alpha = alpha2d.reshape(-1)[:B].reshape(B, 1)
    beta = beta2d.reshape(-1)[:B].reshape(B, 1)
    return mu, upsilon, alpha, beta


def _reference(uid, iid, mu, upsilon, ua, ia, ub, ib):
    # Pure-JAX reference mirroring the PyTorch forward.
    ua_e = ua[uid]            # [B, 1]
    ia_e = ia[iid]
    ub_e = ub[uid]
    ib_e = ib[iid]
    alpha = jnp.maximum(mu * upsilon, EPS)
    beta = jnp.maximum(upsilon - alpha, EPS)
    alpha = alpha + GLOBAL_BIAS
    beta = beta + GLOBAL_BIAS
    alpha = jnp.maximum(alpha + ua_e + ia_e, EPS)
    beta = jnp.maximum(beta + ub_e + ib_e, EPS)
    return mu, upsilon, alpha, beta


if __name__ == "__main__":
    num_users, num_items, B = 16, 16, 8

    key = jax.random.PRNGKey(0)
    k1, k2, k3, k4, k5, k6, k7, k8 = jax.random.split(key, 8)

    # Deterministic "initializer" stand-ins (normal(0, 0.1) for alpha & beta).
    uid_alpha_w = 0.1 * jax.random.normal(k1, (num_users, 1), jnp.float32)
    iid_alpha_w = 0.1 * jax.random.normal(k2, (num_items, 1), jnp.float32)
    uid_beta_w = 0.1 * jax.random.normal(k3, (num_users, 1), jnp.float32)
    iid_beta_w = 0.1 * jax.random.normal(k4, (num_items, 1), jnp.float32)

    uid = jax.random.randint(k5, (B,), 0, num_users, jnp.int32)
    iid = jax.random.randint(k6, (B,), 0, num_items, jnp.int32)
    mu = jax.random.uniform(k7, (B, 1), jnp.float32)
    upsilon = jax.random.uniform(k8, (B, 1), jnp.float32, minval=0.0, maxval=2.0)

    fwd = jax.jit(bias_alpha_beta)
    out = fwd(uid, iid, mu, upsilon,
              uid_alpha_w, iid_alpha_w, uid_beta_w, iid_beta_w)
    out = jax.block_until_ready(out)

    ref = _reference(uid, iid, mu, upsilon,
                     uid_alpha_w, iid_alpha_w, uid_beta_w, iid_beta_w)
    for o, r in zip(out, ref):
        assert o.shape == r.shape and jnp.allclose(o, r, atol=1e-6), (o, r)

    print("KERNEL_OK")
</pallas_src>

<mosaic_0001>
module attributes {stable_mosaic.version = 11 : i64} {
  func.func @_bias_alpha_beta_kernel(%arg0: i32, %arg1: memref<8x128xf32, #tpu.memory_space<vmem>>, %arg2: memref<8x128xf32, #tpu.memory_space<vmem>>, %arg3: memref<8x128xf32, #tpu.memory_space<vmem>>, %arg4: memref<8x128xf32, #tpu.memory_space<vmem>>, %arg5: memref<8x128xf32, #tpu.memory_space<vmem>>, %arg6: memref<8x128xf32, #tpu.memory_space<vmem>>, %arg7: memref<8x128xf32, #tpu.memory_space<vmem>>, %arg8: memref<8x128xf32, #tpu.memory_space<vmem>>) attributes {dimension_semantics = [#tpu.dimension_semantics<parallel>], iteration_bounds = array<i64: 1>, scalar_prefetch = 0 : i64, scratch_operands = 0 : i64, tpu.core_type = #tpu.core_type<tc>, window_params = [{transform_indices = @transform_0, window_bounds = array<i64: 8, 128>}, {transform_indices = @transform_1, window_bounds = array<i64: 8, 128>}, {transform_indices = @transform_2, window_bounds = array<i64: 8, 128>}, {transform_indices = @transform_3, window_bounds = array<i64: 8, 128>}, {transform_indices = @transform_4, window_bounds = array<i64: 8, 128>}, {transform_indices = @transform_5, window_bounds = array<i64: 8, 128>}, {transform_indices = @transform_6, window_bounds = array<i64: 8, 128>}, {transform_indices = @transform_7, window_bounds = array<i64: 8, 128>}]} {
    %c0 = arith.constant 0 : index
    %c0_0 = arith.constant 0 : index
    %0 = vector.load %arg1[%c0, %c0_0] : memref<8x128xf32, #tpu.memory_space<vmem>>, vector<8x128xf32>
    %c0_1 = arith.constant 0 : index
    %c0_2 = arith.constant 0 : index
    %1 = vector.load %arg2[%c0_1, %c0_2] : memref<8x128xf32, #tpu.memory_space<vmem>>, vector<8x128xf32>
    %2 = arith.mulf %0, %1 : vector<8x128xf32>
    %cst = arith.constant 0.00999999977 : f32
    %3 = vector.broadcast %cst : f32 to vector<8x128xf32>
    %4 = arith.maximumf %2, %3 : vector<8x128xf32>
    %5 = arith.subf %1, %4 : vector<8x128xf32>
    %cst_3 = arith.constant 0.00999999977 : f32
    %6 = vector.broadcast %cst_3 : f32 to vector<8x128xf32>
    %7 = arith.maximumf %5, %6 : vector<8x128xf32>
    %cst_4 = arith.constant 3.000000e-01 : f32
    %8 = vector.broadcast %cst_4 : f32 to vector<8x128xf32>
    %9 = arith.addf %4, %8 : vector<8x128xf32>
    %c0_5 = arith.constant 0 : index
    %c0_6 = arith.constant 0 : index
    %10 = vector.load %arg3[%c0_5, %c0_6] : memref<8x128xf32, #tpu.memory_space<vmem>>, vector<8x128xf32>
    %11 = arith.addf %9, %10 : vector<8x128xf32>
    %c0_7 = arith.constant 0 : index
    %c0_8 = arith.constant 0 : index
    %12 = vector.load %arg4[%c0_7, %c0_8] : memref<8x128xf32, #tpu.memory_space<vmem>>, vector<8x128xf32>
    %13 = arith.addf %11, %12 : vector<8x128xf32>
    %cst_9 = arith.constant 0.00999999977 : f32
    %14 = vector.broadcast %cst_9 : f32 to vector<8x128xf32>
    %15 = arith.maximumf %13, %14 : vector<8x128xf32>
    %cst_10 = arith.constant 3.000000e-01 : f32
    %16 = vector.broadcast %cst_10 : f32 to vector<8x128xf32>
    %17 = arith.addf %7, %16 : vector<8x128xf32>
    %c0_11 = arith.constant 0 : index
    %c0_12 = arith.constant 0 : index
    %18 = vector.load %arg5[%c0_11, %c0_12] : memref<8x128xf32, #tpu.memory_space<vmem>>, vector<8x128xf32>
    %19 = arith.addf %17, %18 : vector<8x128xf32>
    %c0_13 = arith.constant 0 : index
    %c0_14 = arith.constant 0 : index
    %20 = vector.load %arg6[%c0_13, %c0_14] : memref<8x128xf32, #tpu.memory_space<vmem>>, vector<8x128xf32>
    %21 = arith.addf %19, %20 : vector<8x128xf32>
    %cst_15 = arith.constant 0.00999999977 : f32
    %22 = vector.broadcast %cst_15 : f32 to vector<8x128xf32>
    %23 = arith.maximumf %21, %22 : vector<8x128xf32>
    %c0_16 = arith.constant 0 : index
    %c0_17 = arith.constant 0 : index
    %24 = vector.load %arg7[%c0_16, %c0_17] : memref<8x128xf32, #tpu.memory_space<vmem>>, vector<8x128xf32>
    tpu.vector_store %arg7[%c0_16, %c0_17], %15 {strides = array<i32>} : memref<8x128xf32, #tpu.memory_space<vmem>>, vector<8x128xf32>,
    %c0_18 = arith.constant 0 : index
    %c0_19 = arith.constant 0 : index
    %25 = vector.load %arg8[%c0_18, %c0_19] : memref<8x128xf32, #tpu.memory_space<vmem>>, vector<8x128xf32>
    tpu.vector_store %arg8[%c0_18, %c0_19], %23 {strides = array<i32>} : memref<8x128xf32, #tpu.memory_space<vmem>>, vector<8x128xf32>,
    return
  }
  func.func @transform_0(%arg0: i32) -> (i32, i32) {
    %c0_i32 = arith.constant 0 : i32
    %c0_i32_0 = arith.constant 0 : i32
    return %arg0, %c0_i32 : i32, i32
  }
  func.func @transform_1(%arg0: i32) -> (i32, i32) {
    %c0_i32 = arith.constant 0 : i32
    %c0_i32_0 = arith.constant 0 : i32
    return %arg0, %c0_i32 : i32, i32
  }
  func.func @transform_2(%arg0: i32) -> (i32, i32) {
    %c0_i32 = arith.constant 0 : i32
    %c0_i32_0 = arith.constant 0 : i32
    return %arg0, %c0_i32 : i32, i32
  }
  func.func @transform_3(%arg0: i32) -> (i32, i32) {
    %c0_i32 = arith.constant 0 : i32
    %c0_i32_0 = arith.constant 0 : i32
    return %arg0, %c0_i32 : i32, i32
  }
  func.func @transform_4(%arg0: i32) -> (i32, i32) {
    %c0_i32 = arith.constant 0 : i32
    %c0_i32_0 = arith.constant 0 : i32
    return %arg0, %c0_i32 : i32, i32
  }
  func.func @transform_5(%arg0: i32) -> (i32, i32) {
    %c0_i32 = arith.constant 0 : i32
    %c0_i32_0 = arith.constant 0 : i32
    return %arg0, %c0_i32 : i32, i32
  }
  func.func @transform_6(%arg0: i32) -> (i32, i32) {
    %c0_i32 = arith.constant 0 : i32
    %c0_i32_0 = arith.constant 0 : i32
    return %arg0, %c0_i32 : i32, i32
  }
  func.func @transform_7(%arg0: i32) -> (i32, i32) {
    %c0_i32 = arith.constant 0 : i32
    %c0_i32_0 = arith.constant 0 : i32
    return %arg0, %c0_i32 : i32, i32
  }
}

</mosaic_0001>

<bundles_post_ra>
// kernel: bias_alpha_beta.1
= control target key start
LH: loop header
LB: loop body
LE: loop exit
PB: predicated region body
PF: predicated region fallthrough
CT: control target
= control target key end

     0   :  { %s117_s0 = inlined_call_operand.vmem [shape: f32[8,128], index: 0, kind: input, shape index: {}]   ;;  %s118_s1 = inlined_call_operand.vmem [shape: f32[8,128], index: 1, kind: input, shape index: {}]   ;;  %s119_s2 = inlined_call_operand.vmem [shape: f32[8,128], index: 2, kind: input, shape index: {}]   ;;  %s120_s3 = inlined_call_operand.vmem [shape: f32[8,128], index: 3, kind: input, shape index: {}]   ;;  %s121_s4 = inlined_call_operand.vmem [shape: f32[8,128], index: 4, kind: input, shape index: {}]   ;;  %s122_s5 = inlined_call_operand.vmem [shape: f32[8,128], index: 5, kind: input, shape index: {}]   ;;  %s123_s6 = inlined_call_operand.vmem [shape: f32[8,128], index: 6, kind: output, shape index: {0}]   ;;  %s124_s7 = inlined_call_operand.vmem [shape: f32[8,128], index: 7, kind: output, shape index: {1}]  }
   0x1   :  { %v25_v0 = vld [vmem:[%s117_s0] sm:$0xff] }
   0x2   :  { %v26_v1 = vld [vmem:[%s118_s1] sm:$0xff] }
   0x3   :  { %v27_v2 = vmul.f32 %v26_v1, %v25_v0  ;;  %v32_v4 = vld [vmem:[%s119_s2] sm:$0xff] }
   0x4   :  { %v34_v7 = vld [vmem:[%s120_s3] sm:$0xff] }
   0x5   :  { %v28_v3 = vmax.f32 %v27_v2, 0.01  ;;  %v38_v10 = vld [vmem:[%s121_s4] sm:$0xff] }
   0x6   :  { %v40_v13 = vld [vmem:[%s122_s5] sm:$0xff] }
   0x7   :  { %v31_v5 = vadd.f32 0.3, %v28_v3  ;;  %v29_v6 = vsub.f32 %v26_v1, %v28_v3 }
   0x9   :  { %v33_v8 = vadd.f32 %v32_v4, %v31_v5  ;;  %v30_v9 = vmax.f32 %v29_v6, 0.01 }
   0xb   :  { %v35_v11 = vadd.f32 %v34_v7, %v33_v8  ;;  %v37_v12 = vadd.f32 0.3, %v30_v9 }
   0xd   :  { %v36_v14 = vmax.f32 %v35_v11, 0.01  ;;  %v39_v15 = vadd.f32 %v38_v10, %v37_v12 }
   0xf   :  { %43 = vst [vmem:[%s123_s6] sm:$0xff] %v36_v14  ;;  %v41_v16 = vadd.f32 %v40_v13, %v39_v15 }
  0x11   :  { %v42_v17 = vmax.f32 %v41_v16, 0.01 }
  0x13   :  { %44 = vst [vmem:[%s124_s7] sm:$0xff] %v42_v17 }

</bundles_post_ra>
